<compile_context>
chip_gen: v6e
topology: v6e:2x2x1
jax: 0.10.0
libtpu: 0.0.40
codegen_flags: <defaults>
</compile_context>

<pallas_src>
import jax
import jax.numpy as jnp
from jax import lax
from jax.experimental import pallas as pl
from jax.experimental.pallas import tpu as pltpu

SMOOTH = 1e-5


def _tree_fold_into(acc_ref, contrib):
    """Accumulate a (1, C, L_TILE) contribution into a (1, C, W) lane-partial
    accumulator with lane-aligned VPU adds; the L_TILE/W slices are combined
    pairwise (tree) to expose ILP instead of a serial add chain."""
    w = acc_ref.shape[-1]
    lt = contrib.shape[-1]
    if lt == w:
        acc_ref[...] += contrib
        return
    parts = [contrib[..., j * w:(j + 1) * w] for j in range(lt // w)]
    while len(parts) > 1:
        merged = [parts[i] + parts[i + 1] for i in range(0, len(parts) - 1, 2)]
        if len(parts) % 2:
            merged.append(parts[-1])
        parts = merged
    acc_ref[...] += parts[0]


def _make_kernel(C, L, l_tile):
    needs_mask = (L % l_tile) != 0

    def kernel(pred_ref, tgt_ref, inter_ref, pred2_ref, cnt_ref):
        l = pl.program_id(1)

        @pl.when(l == 0)
        def _init():
            inter_ref[...] = jnp.zeros_like(inter_ref)
            pred2_ref[...] = jnp.zeros_like(pred2_ref)
            cnt_ref[...] = jnp.zeros_like(cnt_ref)

        pred = pred_ref[...].astype(jnp.float32)          # (1, C, L_TILE)
        tgt = tgt_ref[...].astype(jnp.int32)              # (1, 1, L_TILE)

        # Vectorized one-hot as a boolean compare (no f32 one-hot materialized).
        classes = lax.broadcasted_iota(jnp.int32, (1, C, l_tile), 1)
        eq = tgt == classes                               # (1, C, L_TILE) bool

        if needs_mask:
            # Only traced for ragged L; validity folded into the compare.
            rem = L - l * l_tile
            lane = lax.broadcasted_iota(jnp.int32, (1, C, l_tile), 2)
            valid = lane < rem
            eq = jnp.logical_and(eq, valid)
            pred = jnp.where(valid, pred, 0.0)

        _tree_fold_into(inter_ref, jnp.where(eq, pred, 0.0))   # sum(pred*onehot)
        _tree_fold_into(pred2_ref, pred * pred)                # sum(pred^2)
        _tree_fold_into(cnt_ref, jnp.where(eq, 1.0, 0.0))      # sum(onehot)

    return kernel


def _physical_vmem_bytes():
    """Generation-aware physical VMEM (128 MiB v5e/v6e, 64 MiB v7x)."""
    try:
        info = pltpu.get_tpu_info()
        v = getattr(info, "vmem_capacity_bytes", None)
        if v:
            return int(v)
    except Exception:
        pass
    return 64 * 1024 * 1024   # conservative fallback (v7x per-TC VMEM)


def _choose_l_tile(C, L, pred_itemsize, tgt_itemsize, tile_budget_bytes):
    """Largest L tile such that double-buffered input blocks fit the budget,
    targeting up to ~8 MiB per predict block (well past the per-step-overhead
    knee on every generation)."""
    if L <= 256:
        return L                                  # single full-extent tile
    bytes_per_lane = 2 * (C * pred_itemsize + tgt_itemsize)   # double-buffered
    budget_lanes = tile_budget_bytes // max(bytes_per_lane, 1)
    target_lanes = (8 * 1024 * 1024) // max(C * pred_itemsize, 1)
    lt = int(min(L, budget_lanes, target_lanes))
    lt = max(128, (lt // 128) * 128)
    return min(lt, max(128, (L // 128) * 128))


def _choose_acc_w(l_tile):
    for cand in (512, 256, 128):
        if l_tile % cand == 0:
            return cand
    return l_tile


def dice_loss(predict, target, *, l_tile=None):
    """predict: (N, C, L) float (f32/bf16); target: (N, 1, L) int class indices."""
    N, C, L = predict.shape
    tgt_dtype = jnp.int8 if C <= 127 else jnp.int32
    tgt = target.reshape(N, 1, L).astype(tgt_dtype)

    phys_vmem = _physical_vmem_bytes()
    vmem_limit = max(32 * 1024 * 1024, (phys_vmem * 3) // 4)
    tile_budget = vmem_limit // 2

    if l_tile is None:
        l_tile = _choose_l_tile(C, L,
                                jnp.dtype(predict.dtype).itemsize,
                                jnp.dtype(tgt_dtype).itemsize,
                                tile_budget)
    else:
        # Sanitize user tile: respect (8,128) rule and never exceed L.
        l_tile = int(max(1, min(l_tile, L)))
        if L <= 128:
            l_tile = L
        elif l_tile < L:
            l_tile = max(128, (l_tile // 128) * 128)

    num_l_tiles = pl.cdiv(L, l_tile)
    acc_w = _choose_acc_w(l_tile)

    kernel = _make_kernel(C, L, l_tile)

    out_part = jax.ShapeDtypeStruct((N, C, acc_w), jnp.float32)
    part_spec = pl.BlockSpec((1, C, acc_w), lambda n, l: (n, 0, 0))

    inter_p, pred2_p, cnt_p = pl.pallas_call(
        kernel,
        out_shape=(out_part, out_part, out_part),
        grid=(N, num_l_tiles),
        in_specs=[
            pl.BlockSpec((1, C, l_tile), lambda n, l: (n, 0, l)),
            pl.BlockSpec((1, 1, l_tile), lambda n, l: (n, 0, l)),
        ],
        out_specs=(part_spec, part_spec, part_spec),
        compiler_params=pltpu.CompilerParams(
            dimension_semantics=("parallel", "arbitrary"),
            vmem_limit_bytes=int(vmem_limit),
        ),
    )(predict, tgt)

    # Finalize in plain JAX (tiny: (N, C, acc_w) partials).
    intersection = jnp.sum(inter_p, axis=2)                      # (N, C)
    union = jnp.sum(pred2_p, axis=2) + jnp.sum(cnt_p, axis=2)    # (N, C)
    dice = (2.0 * intersection + SMOOTH) / (union + SMOOTH)
    return 1.0 - jnp.mean(dice)


def dice_loss_ref(predict, target):
    """Pure-JAX reference mirroring the PyTorch forward exactly."""
    N, C, L = predict.shape
    onehot = jax.nn.one_hot(target.reshape(N, L), C, axis=1, dtype=jnp.float32)
    predict = predict.astype(jnp.float32)
    intersection = jnp.sum(predict * onehot, axis=2)
    union = jnp.sum(predict ** 2, axis=2) + jnp.sum(onehot, axis=2)
    dice = (2.0 * intersection + SMOOTH) / (union + SMOOTH)
    return 1.0 - jnp.mean(dice)


if __name__ == "__main__":
    key = jax.random.PRNGKey(0)
    k1, k2, k3, k4 = jax.random.split(key, 4)

    # Small case matching the module's natural layout.
    N, C, L = 2, 4, 16
    predict = jax.nn.softmax(
        jax.random.normal(k1, (N, C, L), dtype=jnp.float32), axis=1)
    target = jax.random.randint(k2, (N, 1, L), 0, C, dtype=jnp.int32)

    loss = dice_loss(predict, target)
    jax.block_until_ready(loss)
    ref = dice_loss_ref(predict, target)
    assert abs(float(loss) - float(ref)) < 1e-5, (float(loss), float(ref))

    # Larger case exercising the tiled path with a ragged last tile
    # (1152 = 4*256 + 128) through the explicit l_tile argument.
    N2, C2, L2 = 2, 4, 1152
    predict2 = jax.nn.softmax(
        jax.random.normal(k3, (N2, C2, L2), dtype=jnp.float32), axis=1)
    target2 = jax.random.randint(k4, (N2, 1, L2), 0, C2, dtype=jnp.int32)

    loss2 = dice_loss(predict2, target2, l_tile=256)
    jax.block_until_ready(loss2)
    ref2 = dice_loss_ref(predict2, target2)
    assert abs(float(loss2) - float(ref2)) < 1e-4, (float(loss2), float(ref2))

    # Default auto-tile path (single large tile, no mask work) on the same data.
    loss3 = dice_loss(predict2, target2)
    jax.block_until_ready(loss3)
    assert abs(float(loss3) - float(ref2)) < 1e-4, (float(loss3), float(ref2))

    print("KERNEL_OK")
</pallas_src>

<mosaic_0001>
module attributes {stable_mosaic.version = 11 : i64} {
  func.func @kernel(%arg0: i32, %arg1: i32, %arg2: memref<1x4x16xf32, #tpu.memory_space<vmem>>, %arg3: memref<1x1x16xi8, #tpu.memory_space<vmem>>, %arg4: memref<1x4x16xf32, #tpu.memory_space<vmem>>, %arg5: memref<1x4x16xf32, #tpu.memory_space<vmem>>, %arg6: memref<1x4x16xf32, #tpu.memory_space<vmem>>) attributes {dimension_semantics = [#tpu.dimension_semantics<parallel>, #tpu.dimension_semantics<arbitrary>], iteration_bounds = array<i64: 2, 1>, scalar_prefetch = 0 : i64, scratch_operands = 0 : i64, tpu.core_type = #tpu.core_type<tc>, window_params = [{transform_indices = @transform_0, window_bounds = array<i64: 1, 4, 16>}, {transform_indices = @transform_1, window_bounds = array<i64: 1, 1, 16>}, {transform_indices = @transform_2, window_bounds = array<i64: 1, 4, 16>}, {transform_indices = @transform_3, window_bounds = array<i64: 1, 4, 16>}, {transform_indices = @transform_4, window_bounds = array<i64: 1, 4, 16>}]} {
    %c0_i32 = arith.constant 0 : i32
    %0 = arith.cmpi eq, %arg1, %c0_i32 : i32
    %1 = arith.extui %0 : i1 to i32
    %c0_i32_0 = arith.constant 0 : i32
    %2 = arith.cmpi ne, %1, %c0_i32_0 : i32
    scf.if %2 {
      %cst_26 = arith.constant 0.000000e+00 : f32
      %24 = vector.broadcast %cst_26 : f32 to vector<1x4x16xf32>
      %c0_27 = arith.constant 0 : index
      %c0_28 = arith.constant 0 : index
      %c0_29 = arith.constant 0 : index
      %25 = vector.load %arg4[%c0_27, %c0_28, %c0_29] : memref<1x4x16xf32, #tpu.memory_space<vmem>>, vector<1x4x16xf32>
      tpu.vector_store %arg4[%c0_27, %c0_28, %c0_29], %24 {strides = array<i32>} : memref<1x4x16xf32, #tpu.memory_space<vmem>>, vector<1x4x16xf32>,
      %cst_30 = arith.constant 0.000000e+00 : f32
      %26 = vector.broadcast %cst_30 : f32 to vector<1x4x16xf32>
      %c0_31 = arith.constant 0 : index
      %c0_32 = arith.constant 0 : index
      %c0_33 = arith.constant 0 : index
      %27 = vector.load %arg5[%c0_31, %c0_32, %c0_33] : memref<1x4x16xf32, #tpu.memory_space<vmem>>, vector<1x4x16xf32>
      tpu.vector_store %arg5[%c0_31, %c0_32, %c0_33], %26 {strides = array<i32>} : memref<1x4x16xf32, #tpu.memory_space<vmem>>, vector<1x4x16xf32>,
      %cst_34 = arith.constant 0.000000e+00 : f32
      %28 = vector.broadcast %cst_34 : f32 to vector<1x4x16xf32>
      %c0_35 = arith.constant 0 : index
      %c0_36 = arith.constant 0 : index
      %c0_37 = arith.constant 0 : index
      %29 = vector.load %arg6[%c0_35, %c0_36, %c0_37] : memref<1x4x16xf32, #tpu.memory_space<vmem>>, vector<1x4x16xf32>
      tpu.vector_store %arg6[%c0_35, %c0_36, %c0_37], %28 {strides = array<i32>} : memref<1x4x16xf32, #tpu.memory_space<vmem>>, vector<1x4x16xf32>,
    } else {
    }
    %c0 = arith.constant 0 : index
    %c0_1 = arith.constant 0 : index
    %c0_2 = arith.constant 0 : index
    %3 = vector.load %arg2[%c0, %c0_1, %c0_2] : memref<1x4x16xf32, #tpu.memory_space<vmem>>, vector<1x4x16xf32>
    %c0_3 = arith.constant 0 : index
    %c0_4 = arith.constant 0 : index
    %c0_5 = arith.constant 0 : index
    %4 = vector.load %arg3[%c0_3, %c0_4, %c0_5] : memref<1x1x16xi8, #tpu.memory_space<vmem>>, vector<1x1x16xi8>
    %5 = arith.extsi %4 : vector<1x1x16xi8> to vector<1x1x16xi32>
    %6 = tpu.iota {dimensions = array<i32: 1>} : vector<1x4x16xi32>
    %7 = vector.broadcast %5 : vector<1x1x16xi32> to vector<1x4x16xi32>
    %8 = arith.cmpi eq, %7, %6 : vector<1x4x16xi32>
    %cst = arith.constant 0.000000e+00 : f32
    %9 = vector.broadcast %cst : f32 to vector<1x4x16xf32>
    %10 = arith.select %8, %3, %9 : vector<1x4x16xi1>, vector<1x4x16xf32>
    %c0_6 = arith.constant 0 : index
    %c0_7 = arith.constant 0 : index
    %c0_8 = arith.constant 0 : index
    %11 = vector.load %arg4[%c0_6, %c0_7, %c0_8] : memref<1x4x16xf32, #tpu.memory_space<vmem>>, vector<1x4x16xf32>
    %12 = arith.addf %11, %10 : vector<1x4x16xf32>
    %c0_9 = arith.constant 0 : index
    %c0_10 = arith.constant 0 : index
    %c0_11 = arith.constant 0 : index
    %13 = vector.load %arg4[%c0_9, %c0_10, %c0_11] : memref<1x4x16xf32, #tpu.memory_space<vmem>>, vector<1x4x16xf32>
    tpu.vector_store %arg4[%c0_9, %c0_10, %c0_11], %12 {strides = array<i32>} : memref<1x4x16xf32, #tpu.memory_space<vmem>>, vector<1x4x16xf32>,
    %14 = arith.mulf %3, %3 : vector<1x4x16xf32>
    %c0_12 = arith.constant 0 : index
    %c0_13 = arith.constant 0 : index
    %c0_14 = arith.constant 0 : index
    %15 = vector.load %arg5[%c0_12, %c0_13, %c0_14] : memref<1x4x16xf32, #tpu.memory_space<vmem>>, vector<1x4x16xf32>
    %16 = arith.addf %15, %14 : vector<1x4x16xf32>
    %c0_15 = arith.constant 0 : index
    %c0_16 = arith.constant 0 : index
    %c0_17 = arith.constant 0 : index
    %17 = vector.load %arg5[%c0_15, %c0_16, %c0_17] : memref<1x4x16xf32, #tpu.memory_space<vmem>>, vector<1x4x16xf32>
    tpu.vector_store %arg5[%c0_15, %c0_16, %c0_17], %16 {strides = array<i32>} : memref<1x4x16xf32, #tpu.memory_space<vmem>>, vector<1x4x16xf32>,
    %cst_18 = arith.constant 1.000000e+00 : f32
    %cst_19 = arith.constant 0.000000e+00 : f32
    %18 = vector.broadcast %cst_18 : f32 to vector<1x4x16xf32>
    %19 = vector.broadcast %cst_19 : f32 to vector<1x4x16xf32>
    %20 = arith.select %8, %18, %19 : vector<1x4x16xi1>, vector<1x4x16xf32>
    %c0_20 = arith.constant 0 : index
    %c0_21 = arith.constant 0 : index
    %c0_22 = arith.constant 0 : index
    %21 = vector.load %arg6[%c0_20, %c0_21, %c0_22] : memref<1x4x16xf32, #tpu.memory_space<vmem>>, vector<1x4x16xf32>
    %22 = arith.addf %21, %20 : vector<1x4x16xf32>
    %c0_23 = arith.constant 0 : index
    %c0_24 = arith.constant 0 : index
    %c0_25 = arith.constant 0 : index
    %23 = vector.load %arg6[%c0_23, %c0_24, %c0_25] : memref<1x4x16xf32, #tpu.memory_space<vmem>>, vector<1x4x16xf32>
    tpu.vector_store %arg6[%c0_23, %c0_24, %c0_25], %22 {strides = array<i32>} : memref<1x4x16xf32, #tpu.memory_space<vmem>>, vector<1x4x16xf32>,
    return
  }
  func.func @transform_0(%arg0: i32, %arg1: i32) -> (i32, i32, i32) {
    %c0_i32 = arith.constant 0 : i32
    %c0_i32_0 = arith.constant 0 : i32
    return %arg0, %c0_i32, %arg1 : i32, i32, i32
  }
  func.func @transform_1(%arg0: i32, %arg1: i32) -> (i32, i32, i32) {
    %c0_i32 = arith.constant 0 : i32
    %c0_i32_0 = arith.constant 0 : i32
    return %arg0, %c0_i32, %arg1 : i32, i32, i32
  }
  func.func @transform_2(%arg0: i32, %arg1: i32) -> (i32, i32, i32) {
    %c0_i32 = arith.constant 0 : i32
    %c0_i32_0 = arith.constant 0 : i32
    %c0_i32_1 = arith.constant 0 : i32
    return %arg0, %c0_i32, %c0_i32_0 : i32, i32, i32
  }
  func.func @transform_3(%arg0: i32, %arg1: i32) -> (i32, i32, i32) {
    %c0_i32 = arith.constant 0 : i32
    %c0_i32_0 = arith.constant 0 : i32
    %c0_i32_1 = arith.constant 0 : i32
    return %arg0, %c0_i32, %c0_i32_0 : i32, i32, i32
  }
  func.func @transform_4(%arg0: i32, %arg1: i32) -> (i32, i32, i32) {
    %c0_i32 = arith.constant 0 : i32
    %c0_i32_0 = arith.constant 0 : i32
    %c0_i32_1 = arith.constant 0 : i32
    return %arg0, %c0_i32, %c0_i32_0 : i32, i32, i32
  }
}

</mosaic_0001>

<bundles_post_ra>
// kernel: tpu_custom_call.1
= control target key start
LH: loop header
LB: loop body
LE: loop exit
PB: predicated region body
PF: predicated region fallthrough
CT: control target
= control target key end

     0   :  { %10 = vsyncpa [#allocation3], 0  ;;  %s1037_s0 = inlined_call_operand.hbm [shape: f32[2,4,16], index: 0, kind: input, shape index: {}]   ;;  %s1038_s1 = inlined_call_operand.vmem [shape: s8[2,1,16], index: 1, kind: input, shape index: {}]   ;;  %s1039_s2 = inlined_call_operand.hbm [shape: f32[2,4,16], index: 2, kind: output, shape index: {0}]   ;;  %s1040_s3 = inlined_call_operand.hbm [shape: f32[2,4,16], index: 3, kind: output, shape index: {1}]   ;;  %s1041_s4 = inlined_call_operand.hbm [shape: f32[2,4,16], index: 4, kind: output, shape index: {2}]  }
   0x1   :  { %12 = vsyncpa [#allocation3 + $0x1], 0 }
   0x2   :  { %13 = vsyncpa [#allocation4], 0 }
   0x3   :  { %15 = vsyncpa [#allocation4 + $0x1], 0 }
   0x4   :  { %16 = vsyncpa [#allocation7], 0 }
   0x5   :  { %18 = vsyncpa [#allocation7 + $0x1], 0  ;;  %s792_s15 = smov 0   ;;  %s794_s16 = smov 0  }
   0x6   :  { %s796_s17 = smov 0   ;;  %s798_s18 = smov 0  }
   0x7   :  { %s800_s19 = smov 0   ;;  %s802_s20 = smov 0  }
   0x8 LB: > { %s823_s21 = sadd.s32 4294967295, %s760_s20   ;;  %s1042_s22 = sadd.s32 4294967294, %s760_s20   ;;  %s760_s20 = sphi %s802_s20, %s24_s20   ;;  %s756_s19 = sphi %s800_s19, %s1056_s19   ;;  %s752_s18 = sphi %s798_s18, %s1055_s18   ;;  %s748_s17 = sphi %s796_s17, %s1054_s17   ;;  %s744_s16 = sphi %s794_s16, %s1053_s16   ;;  %s740_s15 = sphi %s792_s15, %s1052_s15  }
   0x9   : > { %s36_s23 = sadd.s32 1, %s756_s19  ;;  %s45_s24 = sadd.s32 1, %s748_s17 }
   0xa   : > { %p38_p0 = scmp.ge.s32.totalorder %s36_s23, 2  ;;  %p52_p1 = scmp.ne.s32.totalorder %s748_s17, %s744_s16 }
   0xb   : > { %p53_p2 = scmp.eq.s32.totalorder %s760_s20, 0  ;;  %p58_p3 = scmp.ne.s32.totalorder %s744_s16, %s740_s15 }
   0xc   : > { %s1058_s23 = smov (%p38_p0, %s36_s23), 0  ;;  %p59_p5 = scmp.eq.s32.totalorder %s823_s21, 0 }
   0xd   : > { %p835_p4 = por %p53_p2, %p52_p1  ;;  %s40_s26 = ssub.s32 %s756_s19, %s1058_s23 }
   0xe   : > { %p110_p6 = scmp.eq.s32.totalorder %s823_s21, 1  ;;  %p43_p7 = scmp.eq.s32.totalorder %s40_s26, 0 }
   0xf   : > { %p843_p8 = por %p59_p5, %p58_p3  ;;  %p116_p10 = scmp.eq.s32.totalorder %s1042_s22, 1 }
  0x10   : > { %p847_p9 = por %p110_p6, %p52_p1  ;;  %p545_p13 = scmp.lt.s32.totalorder %s760_s20, 2 }
  0x11   : > { %s854_s29 = scalar_select %p43_p7, %s748_s17, %s45_s24  }
  0x12   : > { %p856_p11 = por %p116_p10, %p58_p3  ;;  %s188_s5 = sand.u32 1, %s748_s17  }
  0x13   : > { %s508_s6 = sshll.u32 %s188_s5, 2  ;;  %s509_s7 = sshll.u32 %s756_s19, 6 }
  0x14   : > { %s1046_s30 = scalar_select %p856_p11, 1, 0 }
  0x15   : > { %s198_s10 = scalar_lea.hbm %s1037_s0, %s509_s7  ;;  %s192_s11 = scalar_lea.vmem [#allocation2], %s508_s6 }
  0x16   : > { %s200_s12 = sshll.u32 %s192_s11, 4  ;;  %p869_p0 = pnand %p545_p13, %p835_p4  ;;  %s201_s12 = int_to_ptr.vmem [resolvable:$true] %s200_s12 }
  0x17   : > { %p510_p1 = scmp.ge.s32.totalorder %s760_s20, 1  ;;  %p214_p2 = scmp.lt.s32.totalorder %s760_s20, 3 }
  0x18   : > { %s189_s14 = scalar_lea.sflag [#allocation3], %s188_s5  ;;  %p598_p3 = pneg %p869_p0 }
  0x19   : > { %s609_s24 = scalar_lea.vmem %s201_s12, 64  ;;  %s762_s26 = smov [#allocation2]  }
  0x1a   : > { %p610_p5 = scmp.ne.s32.totalorder %s201_s12, %s609_s24  ;;  %s614_s7 = sshll.u32 %s762_s26, 4  ;;  %s615_s7 = int_to_ptr.vmem [resolvable:$false] %s614_s7 }
  0x1b   : > { %s616_s6 = scalar_lea.vmem %s615_s7, 128  ;;  %p617_p10 = scmp.lt.s32.totalorder %s201_s12, %s615_s7 }
  0x1c   : > { %p612_p6 = pnand %p610_p5, %p598_p3  ;;  %p618_p12 = scmp.lt.s32.totalorder %s616_s6, %s609_s24 }
  0x1e   : > { %p613_p7 = pneg %p612_p6  ;;  %p619_p4 = por %p618_p12, %p617_p10 }
  0x20   : > { %p620_p13 = pnand %p619_p4, %p613_p7 }
  0x22   : > { %623 = shalt.err (!%p620_p13)
}
  0x23   : > { %534 = dma.hbm_to_vmem [thread:$0]  (!%p869_p0), %s198_s10, 64, %s201_s12, %s189_s14  }
  0x24   : > { %p215_p11 = pnand %p510_p1, %p214_p2 }
  0x25   : > { %s884_s25 = sand.u32 (!%p215_p11), 1, %s744_s16  }
  0x26   : > { %218 = sbr.rel (%p215_p11) target bundleno = 116 (0x74), region = 28  ;;  %s511_s5 = sshll.u32 (!%p215_p11), %s884_s25, 2 }
  0x27   : > { %s221_s8 = scalar_lea.sflag (!%p215_p11), [#allocation3], %s884_s25  ;;  %s224_s9 = scalar_lea.vmem (!%p215_p11), [#allocation2], %s511_s5 }
  0x2b   : > { %727 = dma.done.wait (%p843_p8), %s221_s8, 64  }
  0x2c   : > { %729 = vsyncadd (%p843_p8), %s221_s8, 4294967232  ;;  %p265_p12 = scmp.lt.s32.totalorder %s752_s18, 1  ;;  %vm275_vm0 = vcmask 125952   ;;  %v282_v0 = vlaneseq  ;;  %s257_s10 = scalar_lea.vmem [#allocation6], %s511_s5  ;;  %v763_v1 = vmov 0.0  }
  0x2d   : > { %277 = vst.msk [vmem:[%s257_s10] sm:$0xf] %vm275_vm0, %v763_v1  ;;  %s895_s12 = scalar_lea.vmem [#allocation5], %s511_s5  ;;  %s899_s27 = scalar_lea.vmem [#allocation8], %s511_s5  ;;  %v279_v4 = vld [vmem:[%s224_s9] sm:$0xf] }
  0x2e   : > { %s266_s11 = scalar_select %p265_p12, %s752_s18, 1  ;;  %v283_v2 = vshrl.u32 %v282_v0, 7  ;;  %276 = vst.msk [vmem:[%s895_s12] sm:$0xf] %vm275_vm0, %v763_v1  ;;  %278 = vst.msk [vmem:[%s899_s27] sm:$0xf] %vm275_vm0, %v763_v1  ;;  %v294_v7 = vmul.f32 %v279_v4, %v279_v4 }
  0x2f   : > { %s307_s26 = sand.u32 1, %s823_s21   ;;  %s908_s7 = sshll.u32 %s752_s18, 6 }
  0x30   : > { %s270_s24 = scalar_lea.vmem %s1038_s1, %s266_s11  ;;  %v286_v3 = vsub.s32 0, %v283_v2  ;;  %s339_s6 = sshll.u32 %s257_s10, 4  ;;  %s916_s6 = int_to_ptr.vmem [resolvable:$true] %s339_s6 }
  0x31   : > { %v280_v5 = vld [vmem:[%s270_s24] sm:$0x1]  ;;  %s914_s11 = scalar_lea.hbm %s1040_s3, %s908_s7  ;;  %s326_s18 = sshll.u32 %s895_s12, 4  ;;  %s954_s18 = int_to_ptr.vmem [resolvable:$true] %s326_s18 }
  0x32   : > { %v281_v6 = vunpack.c.0.s8 %v280_v5  ;;  %s923_s9 = scalar_lea.sflag [#allocation7], %s307_s26  ;;  %s624_s13 = scalar_lea.vmem %s916_s6, 64 }
  0x33   : > { %p625_p8 = scmp.ne.s32.totalorder %s916_s6, %s624_s13  ;;  %s764_s14 = smov [#allocation6]  }
  0x34   : > { %v295_v8 = vld [vmem:[%s257_s10] sm:$0xf]  ;;  %v287_v9 = vrot.slane %v281_v6, %v286_v3  ;;  %s628_s24 = sshll.u32 %s764_s14, 4  ;;  %s629_s24 = int_to_ptr.vmem [resolvable:$false] %s628_s24 }
  0x35   : > { %v296_v10 = vadd.f32 %v295_v8, %v294_v7  ;;  %v290_v11 = vld [vmem:[%s895_s12] sm:$0xf]  ;;  %v299_v12 = vld [vmem:[%s899_s27] sm:$0xf]  ;;  %p626_p11 = pnand %p625_p8, %p847_p9  ;;  %s630_s5 = scalar_lea.vmem %s629_s24, 128 }
  0x36   : > { %vm288_vm1 = vcmp.eq.s32.totalorder %v287_v9, %v283_v2  ;;  %p631_p1 = scmp.lt.s32.totalorder %s916_s6, %s629_s24  ;;  %p632_p2 = scmp.lt.s32.totalorder %s630_s5, %s624_s13 }
  0x37   : > { %297 = vst.msk [vmem:[%s257_s10] sm:$0xf] %vm275_vm0, %v296_v10  ;;  %v298_v13 = vsel %vm288_vm1, 1.0, %v763_v1  ;;  %v289_v14 = vsel %vm288_vm1, %v279_v4, 0.0  ;;  %p627_p0 = pneg %p626_p11 }
  0x38   : > { %p633_p3 = por %p632_p2, %p631_p1 }
  0x3a   : > { %p634_p5 = pnand %p633_p3, %p627_p0 }
  0x3c   : > { %637 = shalt.err (!%p634_p5)
}
  0x3d   : > { %s638_s10 = scalar_lea.hbm %s914_s11, 64  ;;  %s642_s14 = scalar_lea.hbm %s1040_s3, 128 }
  0x3e   : > { %p639_p6 = scmp.ne.s32.totalorder %s914_s11, %s638_s10  ;;  %p643_p4 = scmp.lt.s32.totalorder %s914_s11, %s1040_s3 }
  0x3f   : > { %p644_p13 = scmp.lt.s32.totalorder %s642_s14, %s638_s10 }
  0x40   : > { %p640_p7 = pnand %p639_p6, %p847_p9 }
  0x41   : > { %p645_p12 = por %p644_p13, %p643_p4 }
  0x42   : > { %p641_p10 = pneg %p640_p7 }
  0x44   : > { %p646_p8 = pnand %p645_p12, %p641_p10 }
  0x46   : > { %649 = shalt.err (!%p646_p8)
}
  0x47   : > { %526 = dma.vmem_to_hbm [thread:$0]  (%p847_p9), %s916_s6, 64, %s914_s11, %s923_s9   ;;  %v291_v15 = vadd.f32 %v290_v11, %v289_v14  ;;  %v300_v16 = vadd.f32 %v299_v12, %v298_v13 }
  0x48   : > { %s950_s13 = scalar_lea.hbm %s1039_s2, %s908_s7  ;;  %s1048_s24 = sshll.u32 %s899_s27, 4  ;;  %s958_s24 = int_to_ptr.vmem [resolvable:$true] %s1048_s24 }
  0x49   : > { %s964_s6 = scalar_lea.hbm %s1041_s4, %s908_s7  ;;  %293 = vst.msk [vmem:[%s895_s12] sm:$0xf] %vm275_vm0, %v291_v15  ;;  %301 = vst.msk [vmem:[%s899_s27] sm:$0xf] %vm275_vm0, %v300_v16  ;;  %s303_s11 = scalar_lea.sflag [#allocation4], %s884_s25 }
  0x4a   : > { %s650_s26 = scalar_lea.vmem %s954_s18, 64  ;;  %s765_s8 = smov [#allocation5]  }
  0x4b   : > { %p651_p11 = scmp.ne.s32.totalorder %s954_s18, %s650_s26  ;;  %s654_s14 = sshll.u32 %s765_s8, 4  ;;  %s655_s14 = int_to_ptr.vmem [resolvable:$false] %s654_s14 }
  0x4c   : > { %s656_s22 = scalar_lea.vmem %s655_s14, 128  ;;  %p657_p2 = scmp.lt.s32.totalorder %s954_s18, %s655_s14 }
  0x4d   : > { %p652_p0 = pnand %p651_p11, %p847_p9  ;;  %p658_p3 = scmp.lt.s32.totalorder %s656_s22, %s650_s26 }
  0x4f   : > { %p653_p1 = pneg %p652_p0  ;;  %p659_p5 = por %p658_p3, %p657_p2 }
  0x51   : > { %p660_p6 = pnand %p659_p5, %p653_p1 }
  0x53   : > { %663 = shalt.err (!%p660_p6)
}
  0x54   : > { %s664_s12 = scalar_lea.hbm %s950_s13, 64  ;;  %s668_s7 = scalar_lea.hbm %s1039_s2, 128 }
  0x55   : > { %p665_p7 = scmp.ne.s32.totalorder %s950_s13, %s664_s12  ;;  %p669_p13 = scmp.lt.s32.totalorder %s950_s13, %s1039_s2 }
  0x56   : > { %p670_p12 = scmp.lt.s32.totalorder %s668_s7, %s664_s12 }
  0x57   : > { %p666_p10 = pnand %p665_p7, %p847_p9 }
  0x58   : > { %p671_p8 = por %p670_p12, %p669_p13 }
  0x59   : > { %p667_p4 = pneg %p666_p10 }
  0x5b   : > { %p672_p11 = pnand %p671_p8, %p667_p4 }
  0x5d   : > { %675 = shalt.err (!%p672_p11)
}
  0x5e   : > { %525 = dma.vmem_to_hbm [thread:$0]  (%p847_p9), %s954_s18, 64, %s950_s13, %s303_s11  }
  0x5f   : > { %s676_s10 = scalar_lea.vmem %s958_s24, 64  ;;  %s766_s26 = smov [#allocation8]  }
  0x60   : > { %p677_p0 = scmp.ne.s32.totalorder %s958_s24, %s676_s10  ;;  %s680_s8 = sshll.u32 %s766_s26, 4  ;;  %s681_s8 = int_to_ptr.vmem [resolvable:$false] %s680_s8 }
  0x61   : > { %s682_s14 = scalar_lea.vmem %s681_s8, 128  ;;  %p683_p3 = scmp.lt.s32.totalorder %s958_s24, %s681_s8 }
  0x62   : > { %p678_p1 = pnand %p677_p0, %p847_p9  ;;  %p684_p5 = scmp.lt.s32.totalorder %s682_s14, %s676_s10 }
  0x64   : > { %p679_p2 = pneg %p678_p1  ;;  %p685_p6 = por %p684_p5, %p683_p3 }
  0x66   : > { %p686_p7 = pnand %p685_p6, %p679_p2 }
  0x68   : > { %689 = shalt.err (!%p686_p7)
}
  0x69   : > { %s690_s22 = scalar_lea.hbm %s964_s6, 64  ;;  %s694_s11 = scalar_lea.hbm %s1041_s4, 128 }
  0x6a   : > { %p691_p10 = scmp.ne.s32.totalorder %s964_s6, %s690_s22  ;;  %p695_p12 = scmp.lt.s32.totalorder %s964_s6, %s1041_s4 }
  0x6b   : > { %p696_p8 = scmp.lt.s32.totalorder %s694_s11, %s690_s22 }
  0x6c   : > { %p692_p4 = pnand %p691_p10, %p847_p9 }
  0x6d   : > { %p697_p11 = por %p696_p8, %p695_p12 }
  0x6e   : > { %p693_p13 = pneg %p692_p4 }
  0x70   : > { %p698_p0 = pnand %p697_p11, %p693_p13 }
  0x72   : > { %701 = shalt.err (!%p698_p0)
}
  0x73   : > { %527 = dma.vmem_to_hbm [thread:$0]  (%p847_p9), %s958_s24, 64, %s964_s6, %s923_s9  }
  0x74 PF: > { %s364_s27 = sand.u32 1, %s740_s15   ;;  %p1049_p1 = scmp.ne.s32.totalorder %s1046_s30, 0 }
  0x75   : > { %p1050_p2 = scmp.ge.s32.totalorder %s760_s20, 2  ;;  %s365_s7 = scalar_lea.sflag [#allocation4], %s364_s27 }
  0x77   : > { %p536_p3 = pnand %p1050_p2, %p1049_p1 }
  0x79   : > { %p537_p5 = pneg %p536_p3 }
  0x7b   : > { %731 = dma.done.wait (%p537_p5), %s365_s7, 64  }
  0x7c   : > { %733 = vsyncadd (%p537_p5), %s365_s7, 4294967232  ;;  %s1051_s21 = sadd.s32 4294967294, %s760_s20  }
  0x7d   : > { %s373_s5 = sand.u32 1, %s1051_s21  }
  0x7e   : > { %s374_s28 = scalar_lea.sflag [#allocation7], %s373_s5 }
  0x7f   : > { %735 = dma.done.wait (%p537_p5), %s374_s28, 128  }
  0x80   : > { %737 = vsyncadd (%p537_p5), %s374_s28, 4294967168  ;;  %s24_s20 = sadd.s32 1, %s760_s20   ;;  %s1052_s15 = smov %s744_s16 }
  0x81   : > { %p21_p9 = scmp.ge.s32.totalorder %s24_s20, 4   ;;  %s1053_s16 = smov %s748_s17 }
  0x82   : > { %s1054_s17 = smov %s854_s29  ;;  %s1055_s18 = smov %s756_s19 }
  0x83   : > { %s1056_s19 = smov %s1058_s23  ;;  %23 = sbr.rel (!%p21_p9) target bundleno = 8 (0x8), region = 112 }
  0x88   :  { %388 = vsyncpa [#allocation3], 1 }
  0x89   :  { %390 = vsyncpa [#allocation3 + $0x1], 1 }
  0x8a   :  { %391 = vsyncpa [#allocation4], 1 }
  0x8b   :  { %393 = vsyncpa [#allocation4 + $0x1], 1 }
  0x8c   :  { %394 = vsyncpa [#allocation7], 1 }
  0x8d   :  { %396 = vsyncpa [#allocation7 + $0x1], 1 }

</bundles_post_ra>
